<compile_context>
chip_gen: v7x
topology: tpu7x:2x2x1
jax: 0.10.0
libtpu: 0.0.40
codegen_flags: <defaults>
</compile_context>

<pallas_src>
import functools
import math

import jax
import jax.numpy as jnp
from jax import lax
from jax.experimental import pallas as pl
from jax.experimental.pallas import tpu as pltpu


# ----------------------------- kernel helpers ------------------------------

def _layer_norm(x, w, b, eps=1e-5):
    # x: (N, D) f32, w/b: (1, D) f32
    mu = jnp.mean(x, axis=-1, keepdims=True)
    xc = x - mu
    var = jnp.mean(xc * xc, axis=-1, keepdims=True)
    return xc * lax.rsqrt(var + eps) * w + b


def _linear(x, w, b):
    # y = x @ w.T + b   with torch nn.Linear weight layout (out, in).
    # x/w may be bf16; accumulation is f32.
    y = lax.dot_general(x, w, (((1,), (1,)), ((), ())),
                        preferred_element_type=jnp.float32)
    return y + b


def _vmem_capacity_bytes():
    """Per-core VMEM capacity; conservative fallback if the query fails."""
    try:
        info = pltpu.get_tpu_info()
        cap = int(getattr(info, "vmem_capacity_bytes", 0) or 0)
        if cap > 0:
            return cap
    except Exception:
        pass
    return 64 << 20   # conservative: assume v7x-sized VMEM


# ------------------------------- the kernel --------------------------------

def backbone_kernel(tl_ref, x_ref,
                    lnq_w_ref, lnq_b_ref,
                    q_w_ref, q_b_ref, kv_w_ref, kv_b_ref,
                    out_w_ref, out_b_ref,
                    lnf_w_ref, lnf_b_ref,
                    ff1_w_ref, ff1_b_ref, ff2_w_ref, ff2_b_ref,
                    lnl_w_ref, lnl_b_ref,
                    o_ref, seqs_ref, *, n_heads, compute_dtype):
    bt, s_len, d = x_ref.shape
    n = bt * s_len
    dh = d // n_heads
    cdt = compute_dtype
    approx = jnp.dtype(cdt) != jnp.dtype(jnp.float32)

    layer = pl.program_id(1)
    last = pl.num_programs(1) - 1

    # ---- init: load (pos-encoded, timeline-masked) item embeddings --------
    @pl.when(layer == 0)
    def _():
        seqs_ref[...] = x_ref[...].reshape(n, d)

    seqs = seqs_ref[...]                                  # (N, D) f32
    tl = tl_ref[...].reshape(n, 1)                        # (N, 1) f32

    # causal mask, recomputed per grid step (cheap iota compare, finite fill)
    row = lax.broadcasted_iota(jnp.int32, (s_len, s_len), 0)
    col = lax.broadcasted_iota(jnp.int32, (s_len, s_len), 1)
    future = col > row                                    # (S, S) bool

    # ---- multi-head self-attention (SASRec: q = LN(seqs), k = v = seqs) ---
    q_in = _layer_norm(seqs, lnq_w_ref[0], lnq_b_ref[0])
    q = _linear(q_in.astype(cdt), q_w_ref[0], q_b_ref[0])     # (N, D), scale pre-folded
    kv = _linear(seqs.astype(cdt), kv_w_ref[0], kv_b_ref[0])  # (N, 2D) fused K/V proj
    k = kv[:, :d]
    v = kv[:, d:]

    if n_heads == 1:
        qh = q.reshape(bt, s_len, d).astype(cdt)
        kh = k.reshape(bt, s_len, d).astype(cdt)
        vh = v.reshape(bt, s_len, d).astype(cdt)
    else:
        def split_heads(t):                               # (N, D) -> (H*bt, S, dh)
            t3 = t.reshape(bt, s_len, d)
            return jnp.concatenate(
                [t3[:, :, i * dh:(i + 1) * dh] for i in range(n_heads)], axis=0)

        qh = split_heads(q).astype(cdt)
        kh = split_heads(k).astype(cdt)
        vh = split_heads(v).astype(cdt)

    # scores: (H*bt, S, S), batched over (head, session)
    scores = lax.dot_general(qh, kh, (((2,), (2,)), ((0,), (0,))),
                             preferred_element_type=jnp.float32)
    scores = jnp.where(future, jnp.float32(-1e30), scores)
    scores = scores - jnp.max(scores, axis=-1, keepdims=True)
    p = jnp.exp(scores)
    p = p * pl.reciprocal(jnp.sum(p, axis=-1, keepdims=True), approx=approx)

    # context: (H*bt, S, dh)
    ctx = lax.dot_general(p.astype(cdt), vh, (((2,), (1,)), ((0,), (0,))),
                          preferred_element_type=jnp.float32)

    # merge heads back onto the lane axis -> (N, D); single full-K out_proj.
    if n_heads == 1:
        ctx_m = ctx.reshape(n, d)
    else:
        ctx_m = jnp.concatenate(
            [ctx[i * bt:(i + 1) * bt] for i in range(n_heads)], axis=2)
        ctx_m = ctx_m.reshape(n, d)
    attn = _linear(ctx_m.astype(cdt), out_w_ref[0], out_b_ref[0])   # K = D
    seqs = q_in + attn                                    # residual (f32)

    # ---- pointwise feed-forward -------------------------------------------
    ff_in = _layer_norm(seqs, lnf_w_ref[0], lnf_b_ref[0])
    h1 = jnp.maximum(_linear(ff_in.astype(cdt), ff1_w_ref[0], ff1_b_ref[0]), 0.0)
    ff = _linear(h1.astype(cdt), ff2_w_ref[0], ff2_b_ref[0])
    seqs = (ff + ff_in) * tl                              # residual + timeline mask
    seqs_ref[...] = seqs

    # ---- last layer: final LayerNorm and store -----------------------------
    @pl.when(layer == last)
    def _():
        out = _layer_norm(seqs, lnl_w_ref[0], lnl_b_ref[0])
        o_ref[...] = out.reshape(bt, s_len, d).astype(o_ref.dtype)


# ------------------------------- wrapper ------------------------------------

def transformer_backbone_forward(sessions, params, *, n_heads, n_blocks,
                                 compute_dtype=jnp.bfloat16,
                                 out_dtype=jnp.float32,
                                 batch_tile=None):
    """Mirrors TransformerTorchBackbone.forward -> (item_embs, session_embs)."""
    f32 = jnp.float32
    item_embs = params["item_emb"]                          # (n_items, D)
    B, S = sessions.shape
    D = item_embs.shape[1]
    L = n_blocks
    DFF = params["ff1_w"].shape[1]
    dh = D // n_heads

    # ---- glue (XLA): embedding gather, inverse positional enc, timeline mask
    seqs = jnp.take(item_embs, sessions, axis=0)                        # (B,S,D)
    pos = jnp.take(params["pos_emb"], jnp.arange(S - 1, -1, -1), axis=0)
    tl = (sessions != 0).astype(f32)[..., None]                         # (B,S,1)
    x0 = (seqs.astype(f32) + pos[None].astype(f32)) * tl                # first mask pre-applied

    # ---- offline weight repacking (fused KV, folded scale, matmul operands
    #      cast to compute_dtype, LN/bias kept in f32)
    scale = 1.0 / float(dh) ** 0.5
    in_w, in_b = params["in_w"], params["in_b"]
    wdt = compute_dtype
    q_w = (in_w[:, 0].astype(f32) * scale).astype(wdt)                  # (L,D,D)
    q_b = (in_b[:, 0].astype(f32) * scale)[:, None, :]                  # (L,1,D)
    kv_w = jnp.concatenate([in_w[:, 1], in_w[:, 2]], axis=1).astype(wdt)    # (L,2D,D)
    kv_b = jnp.concatenate([in_b[:, 1], in_b[:, 2]], axis=1).astype(f32)[:, None, :]
    out_w = params["out_w"].astype(wdt)                                 # (L,D,D) torch (out,in)
    out_b = params["out_b"].astype(f32)[:, None, :]
    ff1_w = params["ff1_w"].astype(wdt)
    ff1_b = params["ff1_b"].astype(f32)[:, None, :]
    ff2_w = params["ff2_w"].astype(wdt)
    ff2_b = params["ff2_b"].astype(f32)[:, None, :]
    lnq_w = params["lnq_w"].astype(f32)[:, None, :]
    lnq_b = params["lnq_b"].astype(f32)[:, None, :]
    lnf_w = params["lnf_w"].astype(f32)[:, None, :]
    lnf_b = params["lnf_b"].astype(f32)[:, None, :]
    lnl_w = params["lnl_w"].astype(f32)[:, None, :]                     # (1,1,D)
    lnl_b = params["lnl_b"].astype(f32)[:, None, :]

    weight_args = [lnq_w, lnq_b, q_w, q_b, kv_w, kv_b, out_w, out_b,
                   lnf_w, lnf_b, ff1_w, ff1_b, ff2_w, ff2_b, lnl_w, lnl_b]

    def _nbytes(shape, dtype):
        return math.prod(shape) * jnp.dtype(dtype).itemsize

    # ---- generation-aware VMEM budget and batch-tile (bt) sizing ----------
    vmem_cap = _vmem_capacity_bytes()
    budget = min(max(24 << 20, vmem_cap - (12 << 20)), 110 << 20, vmem_cap)

    out_isz = jnp.dtype(out_dtype).itemsize
    w_isz = jnp.dtype(wdt).itemsize
    # per-layer weight blocks (double-buffered by the pipeline)
    wblock = sum(_nbytes((1,) + w.shape[1:], w.dtype) for w in weight_args)
    fixed = 2 * wblock + (2 << 20)                          # weights + slack
    # generous per-token VMEM estimate (scratch, f32 temps, casts, score
    # temporaries, double-buffered in/out blocks, lane-padded timeline mask)
    per_token = ((17 * D + 2 * DFF + 4 * n_heads * S) * 4
                 + (5 * D + DFF) * w_isz
                 + 2 * D * 4 + 2 * 128 * 4 + 2 * D * out_isz)

    if batch_tile is None:
        bt_target = max(1, -(-1024 // S))                   # aim for M = bt*S ~ 1024
        bt_vmem = max(1, int((budget - fixed) // max(1, S * per_token)))
        bt = max(1, min(bt_target, bt_vmem, B))
        if vmem_cap <= (64 << 20) and B > 1:                # v7x (2 TCs): keep >= 2 tiles
            bt = max(1, min(bt, -(-B // 2)))
    else:
        bt = max(1, int(batch_tile))

    pad = (-B) % bt
    if pad:
        x0 = jnp.pad(x0, ((0, pad), (0, 0), (0, 0)))
        tl = jnp.pad(tl, ((0, pad), (0, 0), (0, 0)))
    Bp = B + pad
    n_tiles = Bp // bt

    # ---- specs --------------------------------------------------------------
    def layer_spec(w):
        blk = (1,) + w.shape[1:]
        zeros = (0,) * (w.ndim - 1)
        if w.shape[0] == 1:          # layer-invariant (last_layernorm)
            return pl.BlockSpec(blk, lambda b, l, z=zeros: (0,) + z)
        return pl.BlockSpec(blk, lambda b, l, z=zeros: (l,) + z)

    in_specs = [
        pl.BlockSpec((bt, S, 1), lambda b, l: (b, 0, 0)),   # timeline mask
        pl.BlockSpec((bt, S, D), lambda b, l: (b, 0, 0)),   # (emb + pos) * mask
    ] + [layer_spec(w) for w in weight_args]
    out_spec = pl.BlockSpec((bt, S, D), lambda b, l: (b, 0, 0))

    # ---- cost estimate for the XLA scheduler --------------------------------
    flops = int(2 * Bp * S * L * (4 * D * D + 2 * D * DFF + 2 * S * D))
    transcendentals = int(L * n_heads * Bp * S * S)
    weight_total = int(sum(int(w.size) * jnp.dtype(w.dtype).itemsize
                           for w in weight_args))
    bytes_accessed = int(n_tiles * weight_total
                         + Bp * S * (D * 4 + 4 + D * out_isz))
    cost = pl.CostEstimate(flops=flops, transcendentals=transcendentals,
                           bytes_accessed=bytes_accessed)

    kernel = functools.partial(backbone_kernel, n_heads=n_heads,
                               compute_dtype=compute_dtype)

    out = pl.pallas_call(
        kernel,
        out_shape=jax.ShapeDtypeStruct((Bp, S, D), out_dtype),
        grid_spec=pltpu.PrefetchScalarGridSpec(
            num_scalar_prefetch=0,
            grid=(n_tiles, n_blocks),
            in_specs=in_specs,
            out_specs=out_spec,
            scratch_shapes=[pltpu.VMEM((bt * S, D), f32)]),
        compiler_params=pltpu.CompilerParams(
            dimension_semantics=("parallel", "arbitrary"),
            vmem_limit_bytes=int(budget)),
        cost_estimate=cost,
    )(tl, x0, *weight_args)

    session_embs = out[:B]
    return item_embs, session_embs


# --------------------------- plain-JAX reference ----------------------------

def reference_forward(sessions, params, *, n_heads, n_blocks):
    item_embs = params["item_emb"]
    B, S = sessions.shape
    D = item_embs.shape[1]
    dh = D // n_heads

    def ln(x, w, b, eps=1e-5):
        mu = x.mean(-1, keepdims=True)
        var = ((x - mu) ** 2).mean(-1, keepdims=True)
        return (x - mu) * lax.rsqrt(var + eps) * w + b

    seqs = item_embs[sessions]
    pos = params["pos_emb"][jnp.arange(S - 1, -1, -1)]
    tl = (sessions != 0).astype(seqs.dtype)[..., None]
    x = (seqs + pos[None]) * tl
    mask = jnp.where(jnp.triu(jnp.ones((S, S), bool), k=1), -jnp.inf, 0.0)

    for l in range(n_blocks):
        q_in = ln(x, params["lnq_w"][l], params["lnq_b"][l])
        q = q_in @ params["in_w"][l, 0].T + params["in_b"][l, 0]
        k = x @ params["in_w"][l, 1].T + params["in_b"][l, 1]
        v = x @ params["in_w"][l, 2].T + params["in_b"][l, 2]
        qh = q.reshape(B, S, n_heads, dh).transpose(0, 2, 1, 3)
        kh = k.reshape(B, S, n_heads, dh).transpose(0, 2, 1, 3)
        vh = v.reshape(B, S, n_heads, dh).transpose(0, 2, 1, 3)
        s = jnp.einsum("bhqd,bhkd->bhqk", qh, kh) / jnp.sqrt(dh) + mask
        p = jax.nn.softmax(s, axis=-1)
        o = jnp.einsum("bhqk,bhkd->bhqd", p, vh).transpose(0, 2, 1, 3)
        o = o.reshape(B, S, D)
        attn = o @ params["out_w"][l].T + params["out_b"][l]
        x = q_in + attn
        ff_in = ln(x, params["lnf_w"][l], params["lnf_b"][l])
        h1 = jax.nn.relu(ff_in @ params["ff1_w"][l].T + params["ff1_b"][l])
        ff = h1 @ params["ff2_w"][l].T + params["ff2_b"][l]
        x = (ff + ff_in) * tl
    x = ln(x, params["lnl_w"][0], params["lnl_b"][0])
    return item_embs, x


# --------------------------------- main --------------------------------------

if __name__ == "__main__":
    # small deterministic setup
    B, S, D, H, L, DFF, N_ITEMS = 2, 8, 32, 2, 2, 64, 16

    key = jax.random.PRNGKey(0)
    ks = jax.random.split(key, 20)

    def init(k, shape, scale=0.05):
        return (jax.random.normal(k, shape) * scale).astype(jnp.float32)

    params = {
        "item_emb": init(ks[0], (N_ITEMS, D)),
        "pos_emb":  init(ks[1], (S, D)),
        "lnq_w":    1.0 + init(ks[2], (L, D)),
        "lnq_b":    init(ks[3], (L, D)),
        "in_w":     init(ks[4], (L, 3, D, D)),   # torch in_proj_weight split q/k/v
        "in_b":     init(ks[5], (L, 3, D)),
        "out_w":    init(ks[6], (L, D, D)),
        "out_b":    init(ks[7], (L, D)),
        "lnf_w":    1.0 + init(ks[8], (L, D)),
        "lnf_b":    init(ks[9], (L, D)),
        "ff1_w":    init(ks[10], (L, DFF, D)),
        "ff1_b":    init(ks[11], (L, DFF)),
        "ff2_w":    init(ks[12], (L, D, DFF)),
        "ff2_b":    init(ks[13], (L, D)),
        "lnl_w":    1.0 + init(ks[14], (1, D)),
        "lnl_b":    init(ks[15], (1, D)),
    }

    sessions = jax.random.randint(ks[16], (B, S), 0, N_ITEMS, dtype=jnp.int32)
    sessions = sessions.at[0, :2].set(0)   # some padding at the start

    with jax.default_matmul_precision("highest"):
        ref_item_embs, ref_session_embs = reference_forward(
            sessions, params, n_heads=H, n_blocks=L)
    jax.block_until_ready(ref_session_embs)

    # exact-precision path (f32 MXU operands)
    item_embs, sess_f32 = transformer_backbone_forward(
        sessions, params, n_heads=H, n_blocks=L, compute_dtype=jnp.float32)
    jax.block_until_ready(sess_f32)
    assert sess_f32.shape == (B, S, D)
    assert jnp.allclose(sess_f32, ref_session_embs, rtol=5e-3, atol=5e-3), (
        float(jnp.max(jnp.abs(sess_f32 - ref_session_embs))))
    assert jnp.allclose(item_embs, ref_item_embs)

    # production path (bf16 MXU operands; LN / softmax / residuals in f32)
    _, sess_bf16 = transformer_backbone_forward(
        sessions, params, n_heads=H, n_blocks=L, compute_dtype=jnp.bfloat16)
    jax.block_until_ready(sess_bf16)
    assert sess_bf16.shape == (B, S, D)
    assert jnp.allclose(sess_bf16, ref_session_embs, rtol=5e-2, atol=5e-2), (
        float(jnp.max(jnp.abs(sess_bf16 - ref_session_embs))))

    print("KERNEL_OK")
</pallas_src>

<mosaic_0001>
module attributes {stable_mosaic.version = 11 : i64} {
  func.func @backbone_kernel(%arg0: i32, %arg1: i32, %arg2: memref<1x8x1xf32, #tpu.memory_space<vmem>>, %arg3: memref<1x8x32xf32, #tpu.memory_space<vmem>>, %arg4: memref<1x1x32xf32, #tpu.memory_space<vmem>>, %arg5: memref<1x1x32xf32, #tpu.memory_space<vmem>>, %arg6: memref<1x32x32xf32, #tpu.memory_space<vmem>>, %arg7: memref<1x1x32xf32, #tpu.memory_space<vmem>>, %arg8: memref<1x64x32xf32, #tpu.memory_space<vmem>>, %arg9: memref<1x1x64xf32, #tpu.memory_space<vmem>>, %arg10: memref<1x32x32xf32, #tpu.memory_space<vmem>>, %arg11: memref<1x1x32xf32, #tpu.memory_space<vmem>>, %arg12: memref<1x1x32xf32, #tpu.memory_space<vmem>>, %arg13: memref<1x1x32xf32, #tpu.memory_space<vmem>>, %arg14: memref<1x64x32xf32, #tpu.memory_space<vmem>>, %arg15: memref<1x1x64xf32, #tpu.memory_space<vmem>>, %arg16: memref<1x32x64xf32, #tpu.memory_space<vmem>>, %arg17: memref<1x1x32xf32, #tpu.memory_space<vmem>>, %arg18: memref<1x1x32xf32, #tpu.memory_space<vmem>>, %arg19: memref<1x1x32xf32, #tpu.memory_space<vmem>>, %arg20: memref<1x8x32xf32, #tpu.memory_space<vmem>>, %arg21: memref<8x32xf32, #tpu.memory_space<vmem>>) attributes {dimension_semantics = [#tpu.dimension_semantics<parallel>, #tpu.dimension_semantics<arbitrary>], iteration_bounds = array<i64: 2, 2>, scalar_prefetch = 0 : i64, scratch_operands = 1 : i64, tpu.core_type = #tpu.core_type<tc>, window_params = [{transform_indices = @transform_0, window_bounds = array<i64: 1, 8, 1>}, {transform_indices = @transform_1, window_bounds = array<i64: 1, 8, 32>}, {transform_indices = @transform_2, window_bounds = array<i64: 1, 1, 32>}, {transform_indices = @transform_3, window_bounds = array<i64: 1, 1, 32>}, {transform_indices = @transform_4, window_bounds = array<i64: 1, 32, 32>}, {transform_indices = @transform_5, window_bounds = array<i64: 1, 1, 32>}, {transform_indices = @transform_6, window_bounds = array<i64: 1, 64, 32>}, {transform_indices = @transform_7, window_bounds = array<i64: 1, 1, 64>}, {transform_indices = @transform_8, window_bounds = array<i64: 1, 32, 32>}, {transform_indices = @transform_9, window_bounds = array<i64: 1, 1, 32>}, {transform_indices = @transform_10, window_bounds = array<i64: 1, 1, 32>}, {transform_indices = @transform_11, window_bounds = array<i64: 1, 1, 32>}, {transform_indices = @transform_12, window_bounds = array<i64: 1, 64, 32>}, {transform_indices = @transform_13, window_bounds = array<i64: 1, 1, 64>}, {transform_indices = @transform_14, window_bounds = array<i64: 1, 32, 64>}, {transform_indices = @transform_15, window_bounds = array<i64: 1, 1, 32>}, {pipeline_mode = #tpu.pipeline_mode<synchronous>, transform_indices = @transform_16, window_bounds = array<i64: 1, 1, 32>}, {pipeline_mode = #tpu.pipeline_mode<synchronous>, transform_indices = @transform_17, window_bounds = array<i64: 1, 1, 32>}, {transform_indices = @transform_18, window_bounds = array<i64: 1, 8, 32>}]} {
    %c0_i32 = arith.constant 0 : i32
    %0 = arith.cmpi eq, %arg1, %c0_i32 : i32
    %1 = arith.extui %0 : i1 to i32
    %c0_i32_0 = arith.constant 0 : i32
    %2 = arith.cmpi ne, %1, %c0_i32_0 : i32
    scf.if %2 {
      %c0_70 = arith.constant 0 : index
      %c0_71 = arith.constant 0 : index
      %c0_72 = arith.constant 0 : index
      %136 = vector.load %arg3[%c0_70, %c0_71, %c0_72] : memref<1x8x32xf32, #tpu.memory_space<vmem>>, vector<1x8x32xf32>
      %137 = vector.shape_cast %136 : vector<1x8x32xf32> to vector<8x32xf32>
      %c0_73 = arith.constant 0 : index
      %c0_74 = arith.constant 0 : index
      %138 = vector.load %arg21[%c0_73, %c0_74] : memref<8x32xf32, #tpu.memory_space<vmem>>, vector<8x32xf32>
      tpu.vector_store %arg21[%c0_73, %c0_74], %137 {strides = array<i32>} : memref<8x32xf32, #tpu.memory_space<vmem>>, vector<8x32xf32>,
    } else {
    }
    %c0 = arith.constant 0 : index
    %c0_1 = arith.constant 0 : index
    %3 = vector.load %arg21[%c0, %c0_1] : memref<8x32xf32, #tpu.memory_space<vmem>>, vector<8x32xf32>
    %c0_2 = arith.constant 0 : index
    %c0_3 = arith.constant 0 : index
    %c0_4 = arith.constant 0 : index
    %4 = vector.load %arg2[%c0_2, %c0_3, %c0_4] : memref<1x8x1xf32, #tpu.memory_space<vmem>>, vector<1x8x1xf32>
    %5 = vector.shape_cast %4 : vector<1x8x1xf32> to vector<8x1xf32>
    %6 = tpu.iota {dimensions = array<i32: 0>} : vector<8x8xi32>
    %7 = tpu.iota {dimensions = array<i32: 1>} : vector<8x8xi32>
    %8 = arith.cmpi sgt, %7, %6 : vector<8x8xi32>
    %c0_5 = arith.constant 0 : index
    %c0_6 = arith.constant 0 : index
    %c0_7 = arith.constant 0 : index
    %9 = vector.load %arg4[%c0_5, %c0_6, %c0_7] : memref<1x1x32xf32, #tpu.memory_space<vmem>>, vector<1x1x32xf32>
    %10 = vector.shape_cast %9 : vector<1x1x32xf32> to vector<1x32xf32>
    %c0_8 = arith.constant 0 : index
    %c0_9 = arith.constant 0 : index
    %c0_10 = arith.constant 0 : index
    %11 = vector.load %arg5[%c0_8, %c0_9, %c0_10] : memref<1x1x32xf32, #tpu.memory_space<vmem>>, vector<1x1x32xf32>
    %12 = vector.shape_cast %11 : vector<1x1x32xf32> to vector<1x32xf32>
    %cst = arith.constant dense<0.000000e+00> : vector<8xf32>
    %13 = vector.multi_reduction <add>, %3, %cst [1] : vector<8x32xf32> to vector<8xf32>
    %14 = vector.shape_cast %13 : vector<8xf32> to vector<8x1xf32>
    %cst_11 = arith.constant 3.200000e+01 : f32
    %15 = vector.broadcast %cst_11 : f32 to vector<8x1xf32>
    %16 = arith.divf %14, %15 : vector<8x1xf32>
    %17 = vector.broadcast %16 : vector<8x1xf32> to vector<8x32xf32>
    %18 = arith.subf %3, %17 : vector<8x32xf32>
    %19 = arith.mulf %18, %18 : vector<8x32xf32>
    %cst_12 = arith.constant dense<0.000000e+00> : vector<8xf32>
    %20 = vector.multi_reduction <add>, %19, %cst_12 [1] : vector<8x32xf32> to vector<8xf32>
    %21 = vector.shape_cast %20 : vector<8xf32> to vector<8x1xf32>
    %cst_13 = arith.constant 3.200000e+01 : f32
    %22 = vector.broadcast %cst_13 : f32 to vector<8x1xf32>
    %23 = arith.divf %21, %22 : vector<8x1xf32>
    %cst_14 = arith.constant 9.99999974E-6 : f32
    %24 = vector.broadcast %cst_14 : f32 to vector<8x1xf32>
    %25 = arith.addf %23, %24 : vector<8x1xf32>
    %26 = math.rsqrt %25 : vector<8x1xf32>
    %27 = vector.broadcast %26 : vector<8x1xf32> to vector<8x32xf32>
    %28 = arith.mulf %18, %27 : vector<8x32xf32>
    %29 = vector.broadcast %10 : vector<1x32xf32> to vector<8x32xf32>
    %30 = arith.mulf %28, %29 : vector<8x32xf32>
    %31 = vector.broadcast %12 : vector<1x32xf32> to vector<8x32xf32>
    %32 = arith.addf %30, %31 : vector<8x32xf32>
    %c0_15 = arith.constant 0 : index
    %c0_16 = arith.constant 0 : index
    %c0_17 = arith.constant 0 : index
    %33 = vector.load %arg6[%c0_15, %c0_16, %c0_17] : memref<1x32x32xf32, #tpu.memory_space<vmem>>, vector<1x32x32xf32>
    %34 = vector.shape_cast %33 : vector<1x32x32xf32> to vector<32x32xf32>
    %c0_18 = arith.constant 0 : index
    %c0_19 = arith.constant 0 : index
    %c0_20 = arith.constant 0 : index
    %35 = vector.load %arg7[%c0_18, %c0_19, %c0_20] : memref<1x1x32xf32, #tpu.memory_space<vmem>>, vector<1x1x32xf32>
    %36 = vector.shape_cast %35 : vector<1x1x32xf32> to vector<1x32xf32>
    %cst_21 = arith.constant dense<0.000000e+00> : vector<8x32xf32>
    %37 = tpu.matmul %32, %34, %cst_21 {dimension_numbers = #tpu.dot_dimension_numbers<[1], [1], [0], [0], [0, 0, 1, 0], [], []>} : vector<8x32xf32>, vector<32x32xf32>, vector<8x32xf32> -> vector<8x32xf32>
    %38 = vector.broadcast %36 : vector<1x32xf32> to vector<8x32xf32>
    %39 = arith.addf %37, %38 : vector<8x32xf32>
    %c0_22 = arith.constant 0 : index
    %c0_23 = arith.constant 0 : index
    %c0_24 = arith.constant 0 : index
    %40 = vector.load %arg8[%c0_22, %c0_23, %c0_24] : memref<1x64x32xf32, #tpu.memory_space<vmem>>, vector<1x64x32xf32>
    %41 = vector.shape_cast %40 : vector<1x64x32xf32> to vector<64x32xf32>
    %c0_25 = arith.constant 0 : index
    %c0_26 = arith.constant 0 : index
    %c0_27 = arith.constant 0 : index
    %42 = vector.load %arg9[%c0_25, %c0_26, %c0_27] : memref<1x1x64xf32, #tpu.memory_space<vmem>>, vector<1x1x64xf32>
    %43 = vector.shape_cast %42 : vector<1x1x64xf32> to vector<1x64xf32>
    %cst_28 = arith.constant dense<0.000000e+00> : vector<8x64xf32>
    %44 = tpu.matmul %3, %41, %cst_28 {dimension_numbers = #tpu.dot_dimension_numbers<[1], [1], [0], [0], [0, 0, 1, 0], [], []>} : vector<8x32xf32>, vector<64x32xf32>, vector<8x64xf32> -> vector<8x64xf32>
    %45 = vector.broadcast %43 : vector<1x64xf32> to vector<8x64xf32>
    %46 = arith.addf %44, %45 : vector<8x64xf32>
    %47 = vector.extract_strided_slice %46 {offsets = [0, 0], sizes = [8, 32], strides = [1, 1]} : vector<8x64xf32> to vector<8x32xf32>
    %48 = vector.extract_strided_slice %46 {offsets = [0, 32], sizes = [8, 32], strides = [1, 1]} : vector<8x64xf32> to vector<8x32xf32>
    %49 = vector.shape_cast %39 : vector<8x32xf32> to vector<1x8x32xf32>
    %50 = vector.extract_strided_slice %49 {offsets = [0, 0, 0], sizes = [1, 8, 16], strides = [1, 1, 1]} : vector<1x8x32xf32> to vector<1x8x16xf32>
    %51 = vector.extract_strided_slice %49 {offsets = [0, 0, 16], sizes = [1, 8, 16], strides = [1, 1, 1]} : vector<1x8x32xf32> to vector<1x8x16xf32>
    %52 = tpu.concatenate %50, %51 in 0 : vector<1x8x16xf32>, vector<1x8x16xf32> -> vector<2x8x16xf32>
    %53 = vector.shape_cast %47 : vector<8x32xf32> to vector<1x8x32xf32>
    %54 = vector.extract_strided_slice %53 {offsets = [0, 0, 0], sizes = [1, 8, 16], strides = [1, 1, 1]} : vector<1x8x32xf32> to vector<1x8x16xf32>
    %55 = vector.extract_strided_slice %53 {offsets = [0, 0, 16], sizes = [1, 8, 16], strides = [1, 1, 1]} : vector<1x8x32xf32> to vector<1x8x16xf32>
    %56 = tpu.concatenate %54, %55 in 0 : vector<1x8x16xf32>, vector<1x8x16xf32> -> vector<2x8x16xf32>
    %57 = vector.shape_cast %48 : vector<8x32xf32> to vector<1x8x32xf32>
    %58 = vector.extract_strided_slice %57 {offsets = [0, 0, 0], sizes = [1, 8, 16], strides = [1, 1, 1]} : vector<1x8x32xf32> to vector<1x8x16xf32>
    %59 = vector.extract_strided_slice %57 {offsets = [0, 0, 16], sizes = [1, 8, 16], strides = [1, 1, 1]} : vector<1x8x32xf32> to vector<1x8x16xf32>
    %60 = tpu.concatenate %58, %59 in 0 : vector<1x8x16xf32>, vector<1x8x16xf32> -> vector<2x8x16xf32>
    %cst_29 = arith.constant dense<0.000000e+00> : vector<2x8x8xf32>
    %61 = tpu.matmul %52, %56, %cst_29 {dimension_numbers = #tpu.dot_dimension_numbers<[2], [2], [1], [1], [0, 0, 0, 1, 1, 1], [0], [0]>} : vector<2x8x16xf32>, vector<2x8x16xf32>, vector<2x8x8xf32> -> vector<2x8x8xf32>
    %cst_30 = arith.constant -1.000000e+30 : f32
    %62 = vector.shape_cast %8 : vector<8x8xi1> to vector<1x8x8xi1>
    %63 = vector.broadcast %62 : vector<1x8x8xi1> to vector<2x8x8xi1>
    %64 = vector.broadcast %cst_30 : f32 to vector<2x8x8xf32>
    %65 = arith.select %63, %64, %61 : vector<2x8x8xi1>, vector<2x8x8xf32>
    %cst_31 = arith.constant dense<0xFF800000> : vector<2x8xf32>
    %66 = vector.multi_reduction <maximumf>, %65, %cst_31 [2] : vector<2x8x8xf32> to vector<2x8xf32>
    %67 = vector.shape_cast %66 : vector<2x8xf32> to vector<2x8x1xf32>
    %68 = vector.broadcast %67 : vector<2x8x1xf32> to vector<2x8x8xf32>
    %69 = arith.subf %65, %68 : vector<2x8x8xf32>
    %70 = math.exp %69 : vector<2x8x8xf32>
    %cst_32 = arith.constant dense<0.000000e+00> : vector<2x8xf32>
    %71 = vector.multi_reduction <add>, %70, %cst_32 [2] : vector<2x8x8xf32> to vector<2x8xf32>
    %72 = vector.shape_cast %71 : vector<2x8xf32> to vector<2x8x1xf32>
    %73 = tpu.reciprocal %72 : vector<2x8x1xf32> -> vector<2x8x1xf32>
    %74 = vector.broadcast %73 : vector<2x8x1xf32> to vector<2x8x8xf32>
    %75 = arith.mulf %70, %74 : vector<2x8x8xf32>
    %cst_33 = arith.constant dense<0.000000e+00> : vector<2x8x16xf32>
    %76 = tpu.matmul %75, %60, %cst_33 {dimension_numbers = #tpu.dot_dimension_numbers<[2], [1], [1], [2], [0, 0, 0, 1, 1, 2], [0], [0]>} : vector<2x8x8xf32>, vector<2x8x16xf32>, vector<2x8x16xf32> -> vector<2x8x16xf32>
    %77 = vector.extract_strided_slice %76 {offsets = [0, 0, 0], sizes = [1, 8, 16], strides = [1, 1, 1]} : vector<2x8x16xf32> to vector<1x8x16xf32>
    %78 = vector.extract_strided_slice %76 {offsets = [1, 0, 0], sizes = [1, 8, 16], strides = [1, 1, 1]} : vector<2x8x16xf32> to vector<1x8x16xf32>
    %79 = tpu.concatenate %77, %78 in 2 : vector<1x8x16xf32>, vector<1x8x16xf32> -> vector<1x8x32xf32>
    %80 = vector.shape_cast %79 : vector<1x8x32xf32> to vector<8x32xf32>
    %c0_34 = arith.constant 0 : index
    %c0_35 = arith.constant 0 : index
    %c0_36 = arith.constant 0 : index
    %81 = vector.load %arg10[%c0_34, %c0_35, %c0_36] : memref<1x32x32xf32, #tpu.memory_space<vmem>>, vector<1x32x32xf32>
    %82 = vector.shape_cast %81 : vector<1x32x32xf32> to vector<32x32xf32>
    %c0_37 = arith.constant 0 : index
    %c0_38 = arith.constant 0 : index
    %c0_39 = arith.constant 0 : index
    %83 = vector.load %arg11[%c0_37, %c0_38, %c0_39] : memref<1x1x32xf32, #tpu.memory_space<vmem>>, vector<1x1x32xf32>
    %84 = vector.shape_cast %83 : vector<1x1x32xf32> to vector<1x32xf32>
    %cst_40 = arith.constant dense<0.000000e+00> : vector<8x32xf32>
    %85 = tpu.matmul %80, %82, %cst_40 {dimension_numbers = #tpu.dot_dimension_numbers<[1], [1], [0], [0], [0, 0, 1, 0], [], []>} : vector<8x32xf32>, vector<32x32xf32>, vector<8x32xf32> -> vector<8x32xf32>
    %86 = vector.broadcast %84 : vector<1x32xf32> to vector<8x32xf32>
    %87 = arith.addf %85, %86 : vector<8x32xf32>
    %88 = arith.addf %32, %87 : vector<8x32xf32>
    %c0_41 = arith.constant 0 : index
    %c0_42 = arith.constant 0 : index
    %c0_43 = arith.constant 0 : index
    %89 = vector.load %arg12[%c0_41, %c0_42, %c0_43] : memref<1x1x32xf32, #tpu.memory_space<vmem>>, vector<1x1x32xf32>
    %90 = vector.shape_cast %89 : vector<1x1x32xf32> to vector<1x32xf32>
    %c0_44 = arith.constant 0 : index
    %c0_45 = arith.constant 0 : index
    %c0_46 = arith.constant 0 : index
    %91 = vector.load %arg13[%c0_44, %c0_45, %c0_46] : memref<1x1x32xf32, #tpu.memory_space<vmem>>, vector<1x1x32xf32>
    %92 = vector.shape_cast %91 : vector<1x1x32xf32> to vector<1x32xf32>
    %cst_47 = arith.constant dense<0.000000e+00> : vector<8xf32>
    %93 = vector.multi_reduction <add>, %88, %cst_47 [1] : vector<8x32xf32> to vector<8xf32>
    %94 = vector.shape_cast %93 : vector<8xf32> to vector<8x1xf32>
    %cst_48 = arith.constant 3.200000e+01 : f32
    %95 = vector.broadcast %cst_48 : f32 to vector<8x1xf32>
    %96 = arith.divf %94, %95 : vector<8x1xf32>
    %97 = vector.broadcast %96 : vector<8x1xf32> to vector<8x32xf32>
    %98 = arith.subf %88, %97 : vector<8x32xf32>
    %99 = arith.mulf %98, %98 : vector<8x32xf32>
    %cst_49 = arith.constant dense<0.000000e+00> : vector<8xf32>
    %100 = vector.multi_reduction <add>, %99, %cst_49 [1] : vector<8x32xf32> to vector<8xf32>
    %101 = vector.shape_cast %100 : vector<8xf32> to vector<8x1xf32>
    %cst_50 = arith.constant 3.200000e+01 : f32
    %102 = vector.broadcast %cst_50 : f32 to vector<8x1xf32>
    %103 = arith.divf %101, %102 : vector<8x1xf32>
    %cst_51 = arith.constant 9.99999974E-6 : f32
    %104 = vector.broadcast %cst_51 : f32 to vector<8x1xf32>
    %105 = arith.addf %103, %104 : vector<8x1xf32>
    %106 = math.rsqrt %105 : vector<8x1xf32>
    %107 = vector.broadcast %106 : vector<8x1xf32> to vector<8x32xf32>
    %108 = arith.mulf %98, %107 : vector<8x32xf32>
    %109 = vector.broadcast %90 : vector<1x32xf32> to vector<8x32xf32>
    %110 = arith.mulf %108, %109 : vector<8x32xf32>
    %111 = vector.broadcast %92 : vector<1x32xf32> to vector<8x32xf32>
    %112 = arith.addf %110, %111 : vector<8x32xf32>
    %c0_52 = arith.constant 0 : index
    %c0_53 = arith.constant 0 : index
    %c0_54 = arith.constant 0 : index
    %113 = vector.load %arg14[%c0_52, %c0_53, %c0_54] : memref<1x64x32xf32, #tpu.memory_space<vmem>>, vector<1x64x32xf32>
    %114 = vector.shape_cast %113 : vector<1x64x32xf32> to vector<64x32xf32>
    %c0_55 = arith.constant 0 : index
    %c0_56 = arith.constant 0 : index
    %c0_57 = arith.constant 0 : index
    %115 = vector.load %arg15[%c0_55, %c0_56, %c0_57] : memref<1x1x64xf32, #tpu.memory_space<vmem>>, vector<1x1x64xf32>
    %116 = vector.shape_cast %115 : vector<1x1x64xf32> to vector<1x64xf32>
    %cst_58 = arith.constant dense<0.000000e+00> : vector<8x64xf32>
    %117 = tpu.matmul %112, %114, %cst_58 {dimension_numbers = #tpu.dot_dimension_numbers<[1], [1], [0], [0], [0, 0, 1, 0], [], []>} : vector<8x32xf32>, vector<64x32xf32>, vector<8x64xf32> -> vector<8x64xf32>
    %118 = vector.broadcast %116 : vector<1x64xf32> to vector<8x64xf32>
    %119 = arith.addf %117, %118 : vector<8x64xf32>
    %cst_59 = arith.constant 0.000000e+00 : f32
    %120 = vector.broadcast %cst_59 : f32 to vector<8x64xf32>
    %121 = arith.maximumf %119, %120 : vector<8x64xf32>
    %c0_60 = arith.constant 0 : index
    %c0_61 = arith.constant 0 : index
    %c0_62 = arith.constant 0 : index
    %122 = vector.load %arg16[%c0_60, %c0_61, %c0_62] : memref<1x32x64xf32, #tpu.memory_space<vmem>>, vector<1x32x64xf32>
    %123 = vector.shape_cast %122 : vector<1x32x64xf32> to vector<32x64xf32>
    %c0_63 = arith.constant 0 : index
    %c0_64 = arith.constant 0 : index
    %c0_65 = arith.constant 0 : index
    %124 = vector.load %arg17[%c0_63, %c0_64, %c0_65] : memref<1x1x32xf32, #tpu.memory_space<vmem>>, vector<1x1x32xf32>
    %125 = vector.shape_cast %124 : vector<1x1x32xf32> to vector<1x32xf32>
    %cst_66 = arith.constant dense<0.000000e+00> : vector<8x32xf32>
    %126 = tpu.matmul %121, %123, %cst_66 {dimension_numbers = #tpu.dot_dimension_numbers<[1], [1], [0], [0], [0, 0, 1, 0], [], []>} : vector<8x64xf32>, vector<32x64xf32>, vector<8x32xf32> -> vector<8x32xf32>
    %127 = vector.broadcast %125 : vector<1x32xf32> to vector<8x32xf32>
    %128 = arith.addf %126, %127 : vector<8x32xf32>
    %129 = arith.addf %128, %112 : vector<8x32xf32>
    %130 = vector.broadcast %5 : vector<8x1xf32> to vector<8x32xf32>
    %131 = arith.mulf %129, %130 : vector<8x32xf32>
    %c0_67 = arith.constant 0 : index
    %c0_68 = arith.constant 0 : index
    %132 = vector.load %arg21[%c0_67, %c0_68] : memref<8x32xf32, #tpu.memory_space<vmem>>, vector<8x32xf32>
    tpu.vector_store %arg21[%c0_67, %c0_68], %131 {strides = array<i32>} : memref<8x32xf32, #tpu.memory_space<vmem>>, vector<8x32xf32>,
    %c1_i32 = arith.constant 1 : i32
    %133 = arith.cmpi eq, %arg1, %c1_i32 : i32
    %134 = arith.extui %133 : i1 to i32
    %c0_i32_69 = arith.constant 0 : i32
    %135 = arith.cmpi ne, %134, %c0_i32_69 : i32
    scf.if %135 {
      %c0_70 = arith.constant 0 : index
      %c0_71 = arith.constant 0 : index
      %c0_72 = arith.constant 0 : index
      %136 = vector.load %arg18[%c0_70, %c0_71, %c0_72] : memref<1x1x32xf32, #tpu.memory_space<vmem>>, vector<1x1x32xf32>
      %137 = vector.shape_cast %136 : vector<1x1x32xf32> to vector<1x32xf32>
      %c0_73 = arith.constant 0 : index
      %c0_74 = arith.constant 0 : index
      %c0_75 = arith.constant 0 : index
      %138 = vector.load %arg19[%c0_73, %c0_74, %c0_75] : memref<1x1x32xf32, #tpu.memory_space<vmem>>, vector<1x1x32xf32>
      %139 = vector.shape_cast %138 : vector<1x1x32xf32> to vector<1x32xf32>
      %cst_76 = arith.constant dense<0.000000e+00> : vector<8xf32>
      %140 = vector.multi_reduction <add>, %131, %cst_76 [1] : vector<8x32xf32> to vector<8xf32>
      %141 = vector.shape_cast %140 : vector<8xf32> to vector<8x1xf32>
      %cst_77 = arith.constant 3.200000e+01 : f32
      %142 = vector.broadcast %cst_77 : f32 to vector<8x1xf32>
      %143 = arith.divf %141, %142 : vector<8x1xf32>
      %144 = vector.broadcast %143 : vector<8x1xf32> to vector<8x32xf32>
      %145 = arith.subf %131, %144 : vector<8x32xf32>
      %146 = arith.mulf %145, %145 : vector<8x32xf32>
      %cst_78 = arith.constant dense<0.000000e+00> : vector<8xf32>
      %147 = vector.multi_reduction <add>, %146, %cst_78 [1] : vector<8x32xf32> to vector<8xf32>
      %148 = vector.shape_cast %147 : vector<8xf32> to vector<8x1xf32>
      %cst_79 = arith.constant 3.200000e+01 : f32
      %149 = vector.broadcast %cst_79 : f32 to vector<8x1xf32>
      %150 = arith.divf %148, %149 : vector<8x1xf32>
      %cst_80 = arith.constant 9.99999974E-6 : f32
      %151 = vector.broadcast %cst_80 : f32 to vector<8x1xf32>
      %152 = arith.addf %150, %151 : vector<8x1xf32>
      %153 = math.rsqrt %152 : vector<8x1xf32>
      %154 = vector.broadcast %153 : vector<8x1xf32> to vector<8x32xf32>
      %155 = arith.mulf %145, %154 : vector<8x32xf32>
      %156 = vector.broadcast %137 : vector<1x32xf32> to vector<8x32xf32>
      %157 = arith.mulf %155, %156 : vector<8x32xf32>
      %158 = vector.broadcast %139 : vector<1x32xf32> to vector<8x32xf32>
      %159 = arith.addf %157, %158 : vector<8x32xf32>
      %160 = vector.shape_cast %159 : vector<8x32xf32> to vector<1x8x32xf32>
      %c0_81 = arith.constant 0 : index
      %c0_82 = arith.constant 0 : index
      %c0_83 = arith.constant 0 : index
      %161 = vector.load %arg20[%c0_81, %c0_82, %c0_83] : memref<1x8x32xf32, #tpu.memory_space<vmem>>, vector<1x8x32xf32>
      tpu.vector_store %arg20[%c0_81, %c0_82, %c0_83], %160 {strides = array<i32>} : memref<1x8x32xf32, #tpu.memory_space<vmem>>, vector<1x8x32xf32>,
    } else {
    }
    return
  }
  func.func @transform_0(%arg0: i32, %arg1: i32) -> (i32, i32, i32) {
    %c0_i32 = arith.constant 0 : i32
    %c0_i32_0 = arith.constant 0 : i32
    %c0_i32_1 = arith.constant 0 : i32
    return %arg0, %c0_i32, %c0_i32_0 : i32, i32, i32
  }
  func.func @transform_1(%arg0: i32, %arg1: i32) -> (i32, i32, i32) {
    %c0_i32 = arith.constant 0 : i32
    %c0_i32_0 = arith.constant 0 : i32
    %c0_i32_1 = arith.constant 0 : i32
    return %arg0, %c0_i32, %c0_i32_0 : i32, i32, i32
  }
  func.func @transform_2(%arg0: i32, %arg1: i32) -> (i32, i32, i32) {
    %c0_i32 = arith.constant 0 : i32
    %c0_i32_0 = arith.constant 0 : i32
    %c0_i32_1 = arith.constant 0 : i32
    return %arg1, %c0_i32, %c0_i32_0 : i32, i32, i32
  }
  func.func @transform_3(%arg0: i32, %arg1: i32) -> (i32, i32, i32) {
    %c0_i32 = arith.constant 0 : i32
    %c0_i32_0 = arith.constant 0 : i32
    %c0_i32_1 = arith.constant 0 : i32
    return %arg1, %c0_i32, %c0_i32_0 : i32, i32, i32
  }
  func.func @transform_4(%arg0: i32, %arg1: i32) -> (i32, i32, i32) {
    %c0_i32 = arith.constant 0 : i32
    %c0_i32_0 = arith.constant 0 : i32
    %c0_i32_1 = arith.constant 0 : i32
    return %arg1, %c0_i32, %c0_i32_0 : i32, i32, i32
  }
  func.func @transform_5(%arg0: i32, %arg1: i32) -> (i32, i32, i32) {
    %c0_i32 = arith.constant 0 : i32
    %c0_i32_0 = arith.constant 0 : i32
    %c0_i32_1 = arith.constant 0 : i32
    return %arg1, %c0_i32, %c0_i32_0 : i32, i32, i32
  }
  func.func @transform_6(%arg0: i32, %arg1: i32) -> (i32, i32, i32) {
    %c0_i32 = arith.constant 0 : i32
    %c0_i32_0 = arith.constant 0 : i32
    %c0_i32_1 = arith.constant 0 : i32
    return %arg1, %c0_i32, %c0_i32_0 : i32, i32, i32
  }
  func.func @transform_7(%arg0: i32, %arg1: i32) -> (i32, i32, i32) {
    %c0_i32 = arith.constant 0 : i32
    %c0_i32_0 = arith.constant 0 : i32
    %c0_i32_1 = arith.constant 0 : i32
    return %arg1, %c0_i32, %c0_i32_0 : i32, i32, i32
  }
  func.func @transform_8(%arg0: i32, %arg1: i32) -> (i32, i32, i32) {
    %c0_i32 = arith.constant 0 : i32
    %c0_i32_0 = arith.constant 0 : i32
    %c0_i32_1 = arith.constant 0 : i32
    return %arg1, %c0_i32, %c0_i32_0 : i32, i32, i32
  }
  func.func @transform_9(%arg0: i32, %arg1: i32) -> (i32, i32, i32) {
    %c0_i32 = arith.constant 0 : i32
    %c0_i32_0 = arith.constant 0 : i32
    %c0_i32_1 = arith.constant 0 : i32
    return %arg1, %c0_i32, %c0_i32_0 : i32, i32, i32
  }
  func.func @transform_10(%arg0: i32, %arg1: i32) -> (i32, i32, i32) {
    %c0_i32 = arith.constant 0 : i32
    %c0_i32_0 = arith.constant 0 : i32
    %c0_i32_1 = arith.constant 0 : i32
    return %arg1, %c0_i32, %c0_i32_0 : i32, i32, i32
  }
  func.func @transform_11(%arg0: i32, %arg1: i32) -> (i32, i32, i32) {
    %c0_i32 = arith.constant 0 : i32
    %c0_i32_0 = arith.constant 0 : i32
    %c0_i32_1 = arith.constant 0 : i32
    return %arg1, %c0_i32, %c0_i32_0 : i32, i32, i32
  }
  func.func @transform_12(%arg0: i32, %arg1: i32) -> (i32, i32, i32) {
    %c0_i32 = arith.constant 0 : i32
    %c0_i32_0 = arith.constant 0 : i32
    %c0_i32_1 = arith.constant 0 : i32
    return %arg1, %c0_i32, %c0_i32_0 : i32, i32, i32
  }
  func.func @transform_13(%arg0: i32, %arg1: i32) -> (i32, i32, i32) {
    %c0_i32 = arith.constant 0 : i32
    %c0_i32_0 = arith.constant 0 : i32
    %c0_i32_1 = arith.constant 0 : i32
    return %arg1, %c0_i32, %c0_i32_0 : i32, i32, i32
  }
  func.func @transform_14(%arg0: i32, %arg1: i32) -> (i32, i32, i32) {
    %c0_i32 = arith.constant 0 : i32
    %c0_i32_0 = arith.constant 0 : i32
    %c0_i32_1 = arith.constant 0 : i32
    return %arg1, %c0_i32, %c0_i32_0 : i32, i32, i32
  }
  func.func @transform_15(%arg0: i32, %arg1: i32) -> (i32, i32, i32) {
    %c0_i32 = arith.constant 0 : i32
    %c0_i32_0 = arith.constant 0 : i32
    %c0_i32_1 = arith.constant 0 : i32
    return %arg1, %c0_i32, %c0_i32_0 : i32, i32, i32
  }
  func.func @transform_16(%arg0: i32, %arg1: i32) -> (i32, i32, i32) {
    %c0_i32 = arith.constant 0 : i32
    %c0_i32_0 = arith.constant 0 : i32
    %c0_i32_1 = arith.constant 0 : i32
    %c0_i32_2 = arith.constant 0 : i32
    return %c0_i32, %c0_i32_0, %c0_i32_1 : i32, i32, i32
  }
  func.func @transform_17(%arg0: i32, %arg1: i32) -> (i32, i32, i32) {
    %c0_i32 = arith.constant 0 : i32
    %c0_i32_0 = arith.constant 0 : i32
    %c0_i32_1 = arith.constant 0 : i32
    %c0_i32_2 = arith.constant 0 : i32
    return %c0_i32, %c0_i32_0, %c0_i32_1 : i32, i32, i32
  }
  func.func @transform_18(%arg0: i32, %arg1: i32) -> (i32, i32, i32) {
    %c0_i32 = arith.constant 0 : i32
    %c0_i32_0 = arith.constant 0 : i32
    %c0_i32_1 = arith.constant 0 : i32
    return %arg0, %c0_i32, %c0_i32_0 : i32, i32, i32
  }
}

</mosaic_0001>

<bundles_post_ra>
// kernel: tpu_custom_call.1
= control target key start
LH: loop header
LB: loop body
LE: loop exit
PB: predicated region body
PF: predicated region fallthrough
CT: control target
= control target key end

     0   :  { %s2979_s0 = inlined_call_operand.vmem [shape: f32[2,8,1], index: 0, kind: input, shape index: {}]   ;;  %s2980_s1 = inlined_call_operand.vmem [shape: f32[2,8,32], index: 1, kind: input, shape index: {}]   ;;  %s2981_s2 = inlined_call_operand.vmem [shape: f32[2,1,32], index: 2, kind: input, shape index: {}]   ;;  %s2982_s3 = inlined_call_operand.vmem [shape: f32[2,1,32], index: 3, kind: input, shape index: {}]   ;;  %s2983_s4 = inlined_call_operand.vmem [shape: f32[2,32,32], index: 4, kind: input, shape index: {}]   ;;  %s2984_s5 = inlined_call_operand.vmem [shape: f32[2,1,32], index: 5, kind: input, shape index: {}]   ;;  %s2985_s6 = inlined_call_operand.vmem [shape: f32[2,64,32], index: 6, kind: input, shape index: {}]   ;;  %s2986_s7 = inlined_call_operand.vmem [shape: f32[2,1,64], index: 7, kind: input, shape index: {}]   ;;  %s2987_s8 = inlined_call_operand.vmem [shape: f32[2,32,32], index: 8, kind: input, shape index: {}]   ;;  %s2988_s9 = inlined_call_operand.vmem [shape: f32[2,1,32], index: 9, kind: input, shape index: {}]   ;;  %s2989_s10 = inlined_call_operand.vmem [shape: f32[2,1,32], index: 10, kind: input, shape index: {}]   ;;  %s2990_s11 = inlined_call_operand.vmem [shape: f32[2,1,32], index: 11, kind: input, shape index: {}]   ;;  %s2991_s12 = inlined_call_operand.vmem [shape: f32[2,64,32], index: 12, kind: input, shape index: {}]   ;;  %s2992_s13 = inlined_call_operand.vmem [shape: f32[2,1,64], index: 13, kind: input, shape index: {}]   ;;  %s2993_s14 = inlined_call_operand.vmem [shape: f32[2,32,64], index: 14, kind: input, shape index: {}]   ;;  %s2994_s15 = inlined_call_operand.vmem [shape: f32[2,1,32], index: 15, kind: input, shape index: {}]   ;;  %s2995_s16 = inlined_call_operand.vmem [shape: f32[1,1,32], index: 16, kind: input, shape index: {}]   ;;  %s2996_s17 = inlined_call_operand.vmem [shape: f32[1,1,32], index: 17, kind: input, shape index: {}]   ;;  %s2997_s18 = inlined_call_operand.hbm [shape: f32[2,8,32], index: 18, kind: output, shape index: {}]  }
   0x1   :  { %3013 = sst [smem:[#allocation20_spill]] %s2979_s0 }
   0x2   :  { %3014 = sst [smem:[#allocation21_spill]] %s2980_s1 }
   0x3   :  { %3015 = sst [smem:[#allocation22_spill]] %s2981_s2 }
   0x4   :  { %3016 = sst [smem:[#allocation23_spill]] %s2983_s4 }
   0x5   :  { %3017 = sst [smem:[#allocation24_spill]] %s2984_s5 }
   0x6   :  { %3018 = sst [smem:[#allocation25_spill]] %s2985_s6 }
   0x7   :  { %3019 = sst [smem:[#allocation26_spill]] %s2987_s8 }
   0x8   :  { %3020 = sst [smem:[#allocation27_spill]] %s2989_s10 }
   0x9   :  { %3021 = sst [smem:[#allocation28_spill]] %s2993_s14 }
   0xa   :  { %3022 = sst [smem:[#allocation29_spill]] %s2994_s15 }
   0xb   :  { %3023 = sst [smem:[#allocation30_spill]] %s2995_s16 }
   0xc   :  { %3024 = sst [smem:[#allocation31_spill]] %s2996_s17 }
   0xd   :  { %3025 = sst [smem:[#allocation32_spill]] %s2997_s18 }
   0xe   :  { %23 = vsyncpa [#allocation4], 0 }
   0xf   :  { %25 = vsyncpa [#allocation4 + $0x1], 0  ;;  %s2592_s27 = smov 0   ;;  %s2594_s28 = smov 0  }
  0x10   :  { %s2596_s29 = smov 0   ;;  %s2598_s30 = smov 0  }
  0x11   :  { %s2600_s0 = smov 0   ;;  %s2602_s19 = smov 0  }
  0x12   :  { %s2604_s1 = smov 0   ;;  %s2606_s20 = smov 0  }
  0x13 LB: > { %3026 = sst [smem:[#allocation6_spill]] %s2459_s27  ;;  %s2033_s21 = sadd.s32 4294967295, %s2487_s20   ;;  %s2487_s20 = sphi %s2606_s20, %s31_s20   ;;  %s2483_s1 = sphi %s2604_s1, %s3083_s1   ;;  %s2479_s19 = sphi %s2602_s19, %s3082_s19   ;;  %s2475_s0 = sphi %s2600_s0, %s3081_s0   ;;  %s2471_s30 = sphi %s2598_s30, %s3080_s30   ;;  %s2467_s29 = sphi %s2596_s29, %s3079_s29   ;;  %s2463_s28 = sphi %s2594_s28, %s3078_s28   ;;  %s2459_s27 = sphi %s2592_s27, %s3077_s27  }
  0x14   : > { %3027 = sst [smem:[#allocation7_spill]] %s2463_s28  ;;  %s2034_s22 = sadd.s32 4294967294, %s2487_s20  }
  0x15   : > { %3028 = sst [smem:[#allocation8_spill]] %s2467_s29  ;;  %s40_s2 = sadd.s32 1, %s2479_s19 }
  0x16   : > { %3029 = sst [smem:[#allocation9_spill]] %s2471_s30  ;;  %p41_p0 = scmp.ge.s32.totalorder %s40_s2, 2 }
  0x17   : > { %3030 = sst [smem:[#allocation10_spill]] %s2475_s0  ;;  %s43_s23 = sadd.s32 1, %s2483_s1 }
  0x18   : > { %3031 = sst [smem:[#allocation11_spill]] %s2479_s19  ;;  %p518_p1 = scmp.ne.s32.totalorder %s2467_s29, %s2463_s28 }
  0x19   : > { %3032 = sst [smem:[#allocation12_spill]] %s2483_s1  ;;  %p519_p2 = scmp.eq.s32.totalorder %s2033_s21, 3 }
  0x1a   : > { %3033 = sst [smem:[#allocation13_spill]] %s2487_s20  ;;  %s3085_s2 = smov (%p41_p0, %s40_s2), 0 }
  0x1b   : > { %3034 = sst [smem:[#allocation14_spill]] %s3085_s2  ;;  %s3087_s23 = smov (!%p41_p0, %s43_s23), %s2483_s1 }
  0x1c   : > { %p2641_p3 = por %p519_p2, %p518_p1  ;;  %p524_p4 = scmp.ne.s32.totalorder %s2463_s28, %s2459_s27 }
  0x1d   : > { %p45_p5 = scmp.ge.s32.totalorder %s3087_s23, 2  ;;  %p525_p6 = scmp.eq.s32.totalorder %s2034_s22, 3 }
  0x1e   : > { %s3035_s24 = scalar_select %p2641_p3, 1, 0 }
  0x1f   : > { %p2037_p7 = scmp.ge.s32.totalorder %s2487_s20, 1  ;;  %p657_p8 = scmp.lt.s32.totalorder %s2487_s20, 5 }
  0x20   : > { %3036 = sst [smem:[#allocation15_spill]] %s3035_s24  ;;  %s3089_s23 = smov (%p45_p5, %s3087_s23), 0 }
  0x21   : > { %3037 = sst [smem:[#allocation16_spill]] %s3089_s23  ;;  %p2651_p9 = por %p525_p6, %p524_p4 }
  0x22   : > { %p658_p10 = pnand %p2037_p7, %p657_p8  ;;  %s505_s26 = ssub.s32 %s2483_s1, %s3089_s23 }
  0x23   : > { %s3038_s25 = scalar_select %p2651_p9, 1, 0 }
  0x24   : > { %s508_s21 = sadd.s32 1, %s2467_s29  ;;  %p506_p11 = scmp.eq.s32.totalorder %s505_s26, 0 }
  0x25   : > { %3039 = sst [smem:[#allocation17_spill]] %s3038_s25  ;;  %661 = sbr.rel (%p658_p10) target bundleno = 2869 (0xb35), region = 92 }
  0x26   : > { %s2659_s2 = scalar_select %p506_p11, %s2467_s29, %s508_s21  }
  0x28   : > { %3040 = sst [smem:[#allocation18_spill]] %s2659_s2 }
  0x2c   : > { %s3003_s22 = sand.u32 1, %s2463_s28   ;;  %p766_p12 = scmp.lt.s32.totalorder %s2475_s0, 1 }
  0x2d   : > { %s2665_s19 = sshll.u32 %s3003_s22, 3  ;;  %p774_p13 = scmp.lt.s32.totalorder %s2471_s30, 1 }
  0x2e   : > { %s767_s25 = scalar_select %p766_p12, %s2475_s0, 1 }
  0x2f   : > { %s2670_s27 = scalar_select %p774_p13, %s2471_s30, 1 }
  0x30   : > { %s2039_s26 = sshll.u32 %s767_s25, 3  ;;  %s3041_s1 = sld [smem:[#allocation20_spill]] }
  0x31   : > { %s3043_s20 = sld [smem:[#allocation21_spill]]  ;;  %s2107_s15 = sshll.u32 %s2670_s27, 5 }
  0x32   : > { %s3046_s4 = sld [smem:[#allocation23_spill]]  ;;  %s3047_s6 = sld [smem:[#allocation25_spill]] }
  0x33   : > { %s3048_s8 = sld [smem:[#allocation26_spill]]  ;;  %s817_s30 = scalar_lea.vmem %s2992_s13, %s2670_s27 }
  0x34   : > { %s3050_s23 = sld [smem:[#allocation28_spill]]  ;;  %s765_s2 = scalar_lea.vmem [#allocation3], %s2665_s19 }
  0x35   : > { %s3052_s28 = sld [smem:[#allocation9_spill]] }
  0x36   : > { %s2675_s22 = scalar_lea.vmem %s3041_s1, %s2039_s26 }
  0x37   : > { %3042 = sst [smem:[#allocation19_spill]] %s2675_s22  ;;  %s773_s18 = scalar_lea.vmem %s3043_s20, %s2039_s26 }
  0x38   : > { %s2696_s29 = scalar_lea.vmem %s3046_s4, %s2107_s15  ;;  %s2108_s20 = sshll.u32 %s2670_s27, 6 }
  0x39   : > { %s2702_s0 = scalar_lea.vmem %s3047_s6, %s2108_s20  ;;  %s2711_s14 = scalar_lea.vmem %s3048_s8, %s2107_s15 }
  0x3a   : > { %s809_s6 = scalar_lea.vmem %s2990_s11, %s2670_s27  ;;  %s2728_s16 = scalar_lea.vmem %s2991_s12, %s2108_s20 }
  0x3b   : > { %s2737_s22 = scalar_lea.vmem %s3050_s23, %s2107_s15  ;;  %s3051_s4 = sld [smem:[#allocation29_spill]] }
  0x3c   : > { %p2051_p0 = scmp.ne.s32.totalorder %s3052_s28, 0 }
  0x3d   : > { %v830_v0 = vld [vmem:[%s773_s18] sm:$0xff] (!%p2051_p0)  ;;  %vm831_vm0 = vcmask (!%p2051_p0), 261120  }
  0x3e   : > { %829 = sbr.rel (%p2051_p0) target bundleno = 69 (0x45), region = 96  ;;  %832 = vst.msk [vmem:[#allocation2] sm:$0xff] (!%p2051_p0), %vm831_vm0, %v830_v0 }
  0x41   : > { %s825_s10 = scalar_lea.vmem %s3051_s4, %s2670_s27 }
  0x45 PF: > { %v833_v1 = vld [vmem:[#allocation2] sm:$0xff]  ;;  %vm842_vm1 = vcmask 261120   ;;  %v967_v4 = vld [vmem:[%s2702_s0] sm:$0xff]  ;;  %v2489_v6 = vmov 0.0|0.0   ;;  %v969_v8 = vld [vmem:[%s2702_s0 + $0x10] sm:$0xff]  ;;  %vm2490_vm3 = vmmov 0   ;;  %s3057_s20 = scalar_lea.vmem %s2982_s3, %s2670_s27  ;;  %s3058_s25 = scalar_lea.vmem %s2986_s7, %s2670_s27  ;;  %v835_v48 = vlaneseq }
  0x46   : > { %v843_v2 = vsel %vm842_vm1, %v833_v1, 0.0  ;;  %vm2748_vm2 = vmpackc.low %vm842_vm1, %vm842_vm1  ;;  %v968_v5 = vld [vmem:[%s2702_s0 + $0x8] sm:$0xff]  ;;  %2252 = vmatprep.subr.bf16.mxu1 %v2489_v6  ;;  %2244 = vmatprep.subr.bf16.mxu0 %v2489_v6  ;;  %v970_v9 = vld [vmem:[%s2702_s0 + $0x18] sm:$0xff]  ;;  %v2491_v25 = vmov 0.0   ;;  %s3055_s8 = sld [smem:[#allocation22_spill]]  ;;  %vm1085_vm4 = vcmask 130048  }
  0x47   : > { %844 = vadd.xlane.f32.xlu0 %v843_v2  ;;  %v2253_v7 = vpack.c.bf16 %v968_v5, %v967_v4  ;;  %v2257_v10 = vpack.c.bf16 %v970_v9, %v969_v8  ;;  %v971_v16 = vld [vmem:[%s2702_s0 + $0x20] sm:$0xff]  ;;  %v972_v17 = vld [vmem:[%s2702_s0 + $0x28] sm:$0xff]  ;;  %v973_v22 = vld [vmem:[%s2702_s0 + $0x30] sm:$0xff]  ;;  %2180 = vmatprep.mubr.msk.f32.mxu1 %vm2490_vm3, %v2491_v25  ;;  %s2492_s26 = smov 112   ;;  %s3059_s17 = sld [smem:[#allocation24_spill]]  ;;  %v836_v49 = vshrl.u32 %v835_v48, 7 }
  0x48   : > { %v2261_v18 = vpack.c.bf16 %v972_v17, %v971_v16  ;;  %v871_v19 = vld [vmem:[%s2696_s29] sm:$0xff]  ;;  %v872_v20 = vld [vmem:[%s2696_s29 + $0x8] sm:$0xff]  ;;  %v974_v23 = vld [vmem:[%s2702_s0 + $0x38] sm:$0xff]  ;;  %2161 = vmatprep.mubr.msk.f32.mxu0 %vm2490_vm3, %v2491_v25  ;;  %v838_v50 = vand.u32 127, %v835_v48  ;;  %vm1238_vm6 = vcmask 64512   ;;  %s2493_s28 = smov 96  }
  0x49   : > { %2255 = vmatpush3.bf16.xpose.msk.msra.mxu1 %vm2748_vm2, %v2253_v7  ;;  %v2245_v21 = vpack.c.bf16 %v872_v20, %v871_v19  ;;  %v2265_v24 = vpack.c.bf16 %v974_v23, %v973_v22  ;;  %v873_v26 = vld [vmem:[%s2696_s29 + $0x10] sm:$0xff]  ;;  %v874_v27 = vld [vmem:[%s2696_s29 + $0x18] sm:$0xff]  ;;  %v2053_v35 = vld [vmem:[%s3057_s20] ss:$0 sm:$0xff]  ;;  %s2494_s4 = smov 16   ;;  %vm1668_vm7 = vcmask 523264  }
  0x4a   : > { %2256 = vmatprep.subr.bf16.mxu1 %v2489_v6  ;;  %v2249_v28 = vpack.c.bf16 %v874_v27, %v873_v26  ;;  %v2060_v38 = vld [vmem:[%s3058_s25] ss:$0 sm:$0xff]  ;;  %vm839_vm5 = vcmp.gt.s32.totalorder %v838_v50, %v836_v49  ;;  %v1419_v16 = vld [vmem:[%s2711_s14 + $0x8] sm:$0xff]  ;;  %v1421_v19 = vld [vmem:[%s2711_s14 + $0x18] sm:$0xff]  ;;  %s3063_s29 = sld [smem:[#allocation27_spill]] }
  0x4b   : > { %2247 = vmatpush3.bf16.xpose.msk.msra.mxu0 %vm2748_vm2, %v2245_v21  ;;  %v1551_v48 = vld [vmem:[%s2728_s16 + $0x38] sm:$0xff]  ;;  %v1657_v50 = vld [vmem:[%s2737_s22] sm:$0xff]  ;;  %vm2294_vm8 = vmpackc.low %vm1668_vm7, %vm1668_vm7 }
  0x4c   : > { %2248 = vmatprep.subr.bf16.mxu0 %v2489_v6  ;;  %s3056_s15 = scalar_lea.vmem %s3055_s8, %s2670_s27  ;;  %s3061_s8 = scalar_lea.vmem %s2988_s9, %s2670_s27 }
  0x4d   : > { %v2052_v33 = vld [vmem:[%s3056_s15] ss:$0 sm:$0xff]  ;;  %s3060_s21 = scalar_lea.vmem %s3059_s17, %s2670_s27  ;;  %s3062_s15 = sld [smem:[#allocation19_spill]] }
  0x4e   : > { %v2054_v42 = vld [vmem:[%s3060_s21] ss:$0 sm:$0xff] }
  0x50   : > { %s3064_s20 = scalar_lea.vmem %s3063_s29, %s2670_s27 }
  0x51   : > { %2259 = vmatpush3.bf16.xpose.msk.msra.mxu1 %vm2748_vm2, %v2257_v10 }
  0x52   : > { %2260 = vmatprep.subr.bf16.mxu1 %v2489_v6 }
  0x53   : > { %2251 = vmatpush3.bf16.xpose.msk.msra.mxu0 %vm2748_vm2, %v2249_v28  ;;  %v2076_v28 = vld [vmem:[%s3061_s8] ss:$0 sm:$0xff] }
  0x54   : > { %2183 = vmatprep.subr.mxu0 %v2491_v25 }
  0x59   : > { %2263 = vmatpush3.bf16.xpose.msk.msra.mxu1 %vm2748_vm2, %v2261_v18  ;;  %v1420_v18 = vld [vmem:[%s2711_s14 + $0x10] sm:$0xff] }
  0x5a   : > { %2264 = vmatprep.subr.bf16.mxu1 %v2489_v6  ;;  %v2273_v20 = vpack.c.bf16 %v1421_v19, %v1420_v18 }
  0x61   : > { %2267 = vmatpush3.bf16.xpose.msk.msra.mxu1 %vm2748_vm2, %v2265_v24 }
  0x62   : > { %2276 = vmatprep.subr.bf16.mxu1 %v2489_v6 }
  0x68   : > { %2181 = vmatmul.mubr.msk.f32.vlgmr.msra.gmra.mrb[0].mxu1 %vm842_vm1, %v833_v1 }
  0x69   : > { %2230 = vmatprep.mubr.msk.f32.mxu1 %vm2490_vm3, %v2491_v25 }
  0xd4   : > { %v845_v11 = vpop.xlane.xlu0 %844 }
  0xd5   : > { %v847_v12 = vmul.f32 0.03125, %v845_v11 }
  0xd7   : > { %v848_v13 = vsub.f32 %v833_v1, %v847_v12 }
  0xd9   : > { %v849_v14 = vmul.f32 %v848_v13, %v848_v13 }
  0xdb   : > { %v850_v15 = vsel %vm842_vm1, %v849_v14, 0.0 }
  0xdc   : > { %851 = vadd.xlane.f32.xlu0 %v850_v15  ;;  %v1418_v15 = vld [vmem:[%s2711_s14] sm:$0xff] }
  0xdd   : > { %v2269_v17 = vpack.c.bf16 %v1419_v16, %v1418_v15 }
 0x13b   : > { %v1075_v39 = vpop.f32.mrb[0].mxu1 }
 0x13c   : > { %v1076_v40 = vadd.f32 %v2060_v38, %v1075_v39  ;;  %v2182_v41 = vpop.f32.mrb[1].mxu1  ;;  %v1547_v38 = vld [vmem:[%s2728_s16 + $0x18] sm:$0xff] }
 0x13e   : > { %1083 = vrot.lane.b32.xlu1 %v1076_v40, %s2492_s26 }
 0x169   : > { %v852_v29 = vpop.xlane.xlu0 %851 }
 0x16a   : > { %v853_v30 = vmul.f32 0.03125, %v852_v29 }
 0x16c   : > { %v854_v31 = vadd.f32 1e-05, %v853_v30 }
 0x16e   : > { %2379 = vrsqrt.f32 %v854_v31 }
 0x178   : > { %v2380_v32 = vpop.eup %2379 }
 0x179   : > { %v856_v34 = vmul.f32 %v2380_v32, %v848_v13 }
 0x17b   : > { %v863_v36 = vmul.f32 %v2052_v33, %v856_v34  ;;  %v1544_v34 = vld [vmem:[%s2728_s16] sm:$0xff] }
 0x17d   : > { %v2802_v37 = vadd.f32 %v2053_v35, %v863_v36  ;;  %v1545_v35 = vld [vmem:[%s2728_s16 + $0x8] sm:$0xff] }
 0x17e   : > { %v2277_v36 = vpack.c.bf16 %v1545_v35, %v1544_v34 }
 0x17f   : > { %2162 = vmatmul.mubr.msk.f32.vlgmr.msra.gmra.mrb[0].mxu0 %vm842_vm1, %v2802_v37 }
 0x180   : > { %2185 = vmatprep.mubr.msk.f32.mxu0 %vm2490_vm3, %v2491_v25  ;;  %2184 = vmatpush3.xpose.msk.msra.mxu0 %vm1085_vm4, %v1076_v40 }
 0x181   : > { %2188 = vmatprep.subr.mxu0 %v2491_v25  ;;  %2279 = vmatpush3.bf16.xpose.msk.msra.mxu1 %vm2748_vm2, %v2277_v36 }
 0x182   : > { %2280 = vmatprep.subr.bf16.mxu1 %v2489_v6 }
 0x1b0   : > { %v1084_v46 = vpop.permute.xlu1 %1083 }
 0x252   : > { %v963_v43 = vpop.f32.mrb[0].mxu0 }
 0x253   : > { %v964_v44 = vadd.f32 %v2054_v42, %v963_v43  ;;  %v2163_v45 = vpop.f32.mrb[1].mxu0 }
 0x254   : > { %v1549_v45 = vld [vmem:[%s2728_s16 + $0x28] sm:$0xff] }
 0x255   : > { %1080 = vrot.lane.b32.xlu1 %v964_v44, %s2492_s26  ;;  %2186 = vmatmul.mubr.msk.f32.vlgmr.msra.gmra.mrb[2].mxu0 %vm1085_vm4, %v964_v44  ;;  %v1548_v44 = vld [vmem:[%s2728_s16 + $0x20] sm:$0xff] }
 0x256   : > { %2189 = vmatpush3.xpose.msk.msra.mxu0 %vm1085_vm4, %v1084_v46  ;;  %2190 = vmatprep.mubr.msk.f32.mxu0 %vm2490_vm3, %v2491_v25 }
 0x257   : > { %2193 = vmatprep.subr.mxu0 %v2491_v25 }
 0x2c7   : > { %v1081_v47 = vpop.permute.xlu1 %1080 }
 0x2c8   : > { %2191 = vmatmul.mubr.msk.f32.vlgmr.msra.gmra.mrb[4].mxu0 %vm1085_vm4, %v1081_v47  ;;  %v1550_v47 = vld [vmem:[%s2728_s16 + $0x30] sm:$0xff] }
 0x2c9   : > { %2195 = vmatprep.mubr.msk.f32.mxu0 %vm2490_vm3, %v2491_v25  ;;  %v2289_v49 = vpack.c.bf16 %v1551_v48, %v1550_v47 }
 0x328   : > { %v1156_v51 = vpop.f32.mrb[2].mxu0 }
 0x329   : > { %v1236_v52 = vsel %vm839_vm5, -1e+30, %v1156_v51  ;;  %v2187_v53 = vpop.f32.mrb[3].mxu0  ;;  %v1658_v51 = vld [vmem:[%s2737_s22 + $0x8] sm:$0xff] }
 0x32a   : > { %v1239_v54 = vsel %vm1238_vm6, %v1236_v52, -inf  ;;  %v1659_v53 = vld [vmem:[%s2737_s22 + $0x10] sm:$0xff] }
 0x32b   : > { %1240 = vmax.xlane.f32.xlu0 %v1239_v54  ;;  %v1660_v54 = vld [vmem:[%s2737_s22 + $0x18] sm:$0xff] }
 0x341   : > { %1261 = vrot.lane.b32.xlu0 %v1076_v40, %s2493_s28 }
 0x39b   : > { %v1230_v55 = vpop.f32.mrb[4].mxu0 }
 0x39c   : > { %v1237_v56 = vsel %vm839_vm5, -1e+30, %v1230_v55  ;;  %v2192_v57 = vpop.f32.mrb[5].mxu0  ;;  %v2297_v55 = vpack.c.bf16 %v1660_v54, %v1659_v53 }
 0x39d   : > { %v1242_v58 = vsel %vm1238_vm6, %v1237_v56, -inf }
 0x39e   : > { %1243 = vmax.xlane.f32.xlu1 %v1242_v58 }
 0x3b8   : > { %v1241_v59 = vpop.xlane.xlu0 %1240 }
 0x3b9   : > { %v1245_v60 = vsub.f32 %v1236_v52, %v1241_v59  ;;  %v2293_v52 = vpack.c.bf16 %v1658_v51, %v1657_v50  ;;  %v2082_v59 = vld [vmem:[%s3064_s20] ss:$0 sm:$0xff] }
 0x3bb   : > { %v1247_v61 = vmul.f32 1.442695, %v1245_v60 }
 0x3bc   : > { %v1262_v62 = vpop.permute.xlu0 %1261 }
 0x3bd   : > { %2381 = vpow2.f32 %v1247_v61  ;;  %2194 = vmatpush3.msra.mxu0 %v1262_v62 }
 0x3be   : > { %2198 = vmatprep.subr.mxu0 %v2491_v25 }
 0x3c7   : > { %v2382_v63 = vpop.eup %2381 }
 0x3c8   : > { %v1251_v0 = vsel %vm1238_vm6, %v2382_v63, 0.0 }
 0x3c9   : > { %1252 = vadd.xlane.f32.xlu0 %v1251_v0  ;;  %v2495_v0 = vmov 0  }
 0x3ca   : > { %2378 = vset.pattern.permute.xlu0 %v2495_v0 }
 0x42b   : > { %v1244_v1 = vpop.xlane.xlu1 %1243 }
 0x42c   : > { %v1246_v2 = vsub.f32 %v1237_v56, %v1244_v1  ;;  %v2084_v1 = vld [vmem:[%s817_s30] ss:$0 sm:$0xff]  ;;  %s3066_s30 = sld [smem:[#allocation9_spill]] }
 0x42e   : > { %v1249_v4 = vmul.f32 1.442695, %v1246_v2 }
 0x430   : > { %2383 = vpow2.f32 %v1249_v4 }
 0x432   : > { %p2100_p1 = scmp.ne.s32.totalorder %s3066_s30, 1 }
 0x433   : > { %s3067_s23 = sld [smem:[#allocation30_spill]] (!%p2100_p1) }
 0x43a   : > { %v2384_v5 = vpop.eup %2383 }
 0x43b   : > { %v1254_v7 = vsel %vm1238_vm6, %v2384_v5, 0.0 }
 0x43c   : > { %1255 = vadd.xlane.f32.xlu0 %v1254_v7 }
 0x452   : > { %1337 = vrot.lane.b32.xlu0 %v1084_v46, %s2493_s28  ;;  %v2285_v46 = vpack.c.bf16 %v1549_v45, %v1548_v44  ;;  %s3068_s28 = sld [smem:[#allocation31_spill]] (!%p2100_p1) }
 0x456   : > { %v1253_v8 = vpop.xlane.xlu0 %1252 }
 0x457   : > { %2385 = vrcp.f32 %v1253_v8  ;;  %v2094_v8 = vld [vmem:[%s825_s10] ss:$0 sm:$0xff] }
 0x461   : > { %v2386_v9 = vpop.eup %2385 }
 0x462   : > { %v1259_v10 = vmul.f32 %v2386_v9, %v2382_v63  ;;  %v834_v63 = vld [vmem:[%s3062_s15] sm:$0xff] }
 0x464   : > { %2196 = vmatmul.mubr.msk.f32.vlgmr.msra.gmra.mrb[6].mxu0 %vm1238_vm6, %v1259_v10 }
 0x465   : > { %2200 = vmatprep.mubr.msk.f32.mxu0 %vm2490_vm3, %v2491_v25 }
 0x4c9   : > { %v1256_v11 = vpop.xlane.xlu0 %1255 }
 0x4ca   : > { %2387 = vrcp.f32 %v1256_v11 }
 0x4cd   : > { %v1338_v12 = vpop.permute.xlu0 %1337 }
 0x4ce   : > { %2199 = vmatpush3.msra.mxu0 %v1338_v12 }
 0x4cf   : > { %2268 = vmatprep.subr.bf16.mxu0 %v2489_v6 }
 0x4d4   : > { %v2388_v13 = vpop.eup %2387 }
 0x4d5   : > { %v1260_v14 = vmul.f32 %v2388_v13, %v2384_v5 }
 0x4d7   : > { %2201 = vmatmul.mubr.msk.f32.vlgmr.msra.gmra.mrb[8].mxu0 %vm1238_vm6, %v1260_v14 }
 0x4d8   : > { %2211 = vmatprep.mubr.msk.f32.mxu0 %vm2490_vm3, %v2491_v25  ;;  %2271 = vmatpush3.bf16.xpose.msk.msra.mxu0 %vm2748_vm2, %v2269_v17 }
 0x4d9   : > { %2272 = vmatprep.subr.bf16.mxu0 %v2489_v6 }
 0x4e0   : > { %2275 = vmatpush3.bf16.xpose.msk.msra.mxu0 %vm2748_vm2, %v2273_v20 }
 0x4e1   : > { %2292 = vmatprep.subr.bf16.mxu0 %v2489_v6 }
 0x537   : > { %v1333_v21 = vpop.f32.mrb[6].mxu0 }
 0x538   : > { %v2197_v22 = vpop.f32.mrb[7].mxu0 }
 0x5aa   : > { %v1409_v23 = vpop.f32.mrb[8].mxu0 }
 0x5ab   : > { %1414 = vrot.lane.b32.xlu1 %v1409_v23, %s2494_s4  ;;  %v2202_v24 = vpop.f32.mrb[9].mxu0 }
 0x61d   : > { %v1415_v26 = vpop.permute.xlu1 %1414 }
 0x61e   : > { %v1417_v27 = vsel %vm1085_vm4, %v1333_v21, %v1415_v26  ;;  %v2101_v26 = vld [vmem:[%s3067_s23] ss:$0 sm:$0xff] (!%p2100_p1) }
 0x61f   : > { %2212 = vmatmul.mubr.msk.f32.vlgmr.msra.gmra.mrb[10].mxu0 %vm842_vm1, %v1417_v27 }
 0x620   : > { %2241 = vmatprep.mubr.msk.f32.mxu0 %vm2490_vm3, %v2491_v25  ;;  %v1546_v25 = vld [vmem:[%s2728_s16 + $0x10] sm:$0xff]  ;;  %2295 = vmatpush3.bf16.xpose.msk.msra.mxu0 %vm2294_vm8, %v2293_v52 }
 0x621   : > { %v2281_v39 = vpack.c.bf16 %v1547_v38, %v1546_v25  ;;  %2296 = vmatprep.subr.bf16.mxu0 %v2489_v6 }
 0x623   : > { %2283 = vmatpush3.bf16.xpose.msk.msra.mxu1 %vm2748_vm2, %v2281_v39 }
 0x624   : > { %2284 = vmatprep.subr.bf16.mxu1 %v2489_v6 }
 0x628   : > { %2299 = vmatpush3.bf16.xpose.msk.msra.mxu0 %vm2294_vm8, %v2297_v55 }
 0x62b   : > { %2287 = vmatpush3.bf16.xpose.msk.msra.mxu1 %vm2748_vm2, %v2285_v46 }
 0x62c   : > { %2288 = vmatprep.subr.bf16.mxu1 %v2489_v6  ;;  %v2083_v6 = vld [vmem:[%s809_s6] ss:$0 sm:$0xff] }
 0x633   : > { %2291 = vmatpush3.bf16.xpose.msk.msra.mxu1 %vm2748_vm2, %v2289_v49 }
 0x6f2   : > { %v1510_v29 = vpop.f32.mrb[10].mxu0 }
 0x6f3   : > { %v1511_v30 = vadd.f32 %v2076_v28, %v1510_v29  ;;  %v2213_v31 = vpop.f32.mrb[11].mxu0  ;;  %v2102_v28 = vld [vmem:[%s3068_s28] ss:$0 sm:$0xff] (!%p2100_p1) }
 0x6f5   : > { %v1514_v32 = vadd.f32 %v1511_v30, %v2802_v37 }
 0x6f7   : > { %v1517_v33 = vsel %vm842_vm1, %v1514_v32, 0.0 }
 0x6f8   : > { %1518 = vadd.xlane.f32.xlu0 %v1517_v33 }
 0x70e   : > { %1757 = vperm.xlu0 %2378, %v834_v63  }
 0x785   : > { %v1519_v37 = vpop.xlane.xlu0 %1518 }
 0x786   : > { %v1520_v40 = vmul.f32 0.03125, %v1519_v37 }
 0x788   : > { %v1521_v41 = vsub.f32 %v1514_v32, %v1520_v40 }
 0x78a   : > { %v1522_v42 = vmul.f32 %v1521_v41, %v1521_v41 }
 0x78c   : > { %v1523_v43 = vsel %vm842_vm1, %v1522_v42, 0.0 }
 0x78d   : > { %1524 = vadd.xlane.f32.xlu1 %v1523_v43  ;;  %v1758_v12 = vpop.permute.xlu0 %1757 }
 0x81a   : > { %v1525_v3 = vpop.xlane.xlu1 %1524 }
 0x81b   : > { %v1526_v56 = vmul.f32 0.03125, %v1525_v3 }
 0x81d   : > { %v1527_v57 = vadd.f32 1e-05, %v1526_v56 }
 0x81f   : > { %2389 = vrsqrt.f32 %v1527_v57 }
 0x829   : > { %v2390_v58 = vpop.eup %2389 }
 0x82a   : > { %v1529_v60 = vmul.f32 %v2390_v58, %v1521_v41 }
 0x82c   : > { %v1536_v61 = vmul.f32 %v2082_v59, %v1529_v60 }
 0x82e   : > { %v1543_v62 = vadd.f32 %v2083_v6, %v1536_v61 }
 0x830   : > { %2231 = vmatmul.mubr.msk.f32.vlgmr.msra.gmra.mrb[2].mxu1 %vm842_vm1, %v1543_v62 }
 0x903   : > { %v1652_v2 = vpop.f32.mrb[2].mxu1 }
 0x904   : > { %v1653_v4 = vadd.f32 %v2084_v1, %v1652_v2  ;;  %v2232_v5 = vpop.f32.mrb[3].mxu1 }
 0x906   : > { %v1656_v7 = vmax.f32 %v1653_v4, 0.0 }
 0x908   : > { %2242 = vmatmul.mubr.msk.f32.vlgmr.msra.gmra.mrb[12].mxu0 %vm1668_vm7, %v1656_v7 }
 0x9db   : > { %v1750_v9 = vpop.f32.mrb[12].mxu0 }
 0x9dc   : > { %v1751_v10 = vadd.f32 %v2094_v8, %v1750_v9  ;;  %v2243_v11 = vpop.f32.mrb[13].mxu0  ;;  %1765 = sbr.rel (%p2100_p1) target bundleno = 2844 (0xb1c), region = 100 }
 0x9de   : > { %v1754_v13 = vadd.f32 %v1751_v10, %v1543_v62 }
 0x9e0   : > { %v1760_v14 = vmul.f32 %v1758_v12, %v1754_v13 }
 0x9e2   : > { %1761 = vst.msk [vmem:[#allocation2] sm:$0xff] %vm842_vm1, %v1760_v14  ;;  %v1768_v15 = vsel (!%p2100_p1), %vm842_vm1, %v1760_v14, 0.0 }
 0x9e3   : > { %1769 = vadd.xlane.f32.xlu0 %v1768_v15 }
 0xa70   : > { %v1770_v16 = vpop.xlane.xlu0 %1769 }
 0xa71   : > { %v1771_v17 = vmul.f32 0.03125, %v1770_v16 }
 0xa73   : > { %v1772_v18 = vsub.f32 %v1760_v14, %v1771_v17 }
 0xa75   : > { %v1773_v19 = vmul.f32 %v1772_v18, %v1772_v18 }
 0xa77   : > { %v1774_v20 = vsel %vm842_vm1, %v1773_v19, 0.0 }
 0xa78   : > { %1775 = vadd.xlane.f32.xlu0 %v1774_v20 }
 0xb05   : > { %v1776_v21 = vpop.xlane.xlu0 %1775 }
 0xb06   : > { %v1777_v22 = vmul.f32 0.03125, %v1776_v21 }
 0xb08   : > { %v1778_v23 = vadd.f32 1e-05, %v1777_v22 }
 0xb0a   : > { %2391 = vrsqrt.f32 %v1778_v23 }
 0xb14   : > { %v2392_v24 = vpop.eup %2391 }
 0xb15   : > { %v1780_v27 = vmul.f32 %v2392_v24, %v1772_v18 }
 0xb17   : > { %v1787_v29 = vmul.f32 %v2101_v26, %v1780_v27 }
 0xb19   : > { %v1794_v30 = vadd.f32 %v2102_v28, %v1787_v29 }
 0xb1b   : > { %1795 = vst.msk [vmem:[%s765_s2] sm:$0xff] %vm842_vm1, %v1794_v30 }
 0xb1c PF: > { %s3069_s4 = sld [smem:[#allocation10_spill]]  ;;  %s3070_s14 = sld [smem:[#allocation7_spill]] }
 0xb1d   : > { %s3072_s18 = sld [smem:[#allocation32_spill]]  ;;  %s1810_s20 = sshll.u32 %s765_s2, 4  ;;  %s1811_s20 = int_to_ptr.vmem [resolvable:$true] %s1810_s20 }
 0xb1e   : > { %s2393_s22 = scalar_lea.vmem %s1811_s20, 128  ;;  %s2496_s25 = smov [#allocation3]  }
 0xb1f   : > { %p2394_p2 = scmp.ne.s32.totalorder %s1811_s20, %s2393_s22  ;;  %s2397_s6 = sshll.u32 %s2496_s25, 4  ;;  %s2398_s6 = int_to_ptr.vmem [resolvable:$false] %s2397_s6 }
 0xb20   : > { %s2399_s26 = scalar_lea.vmem %s2398_s6, 256  ;;  %p2400_p6 = scmp.lt.s32.totalorder %s1811_s20, %s2398_s6 }
 0xb21   : > { %p2395_p4 = pnand %p2394_p2, %p2641_p3  ;;  %p2401_p7 = scmp.lt.s32.totalorder %s2399_s26, %s2393_s22 }
 0xb22   : > { %s2104_s8 = sshll.u32 %s3069_s4, 7  ;;  %s3073_s0 = sand.u32 1, %s3070_s14  }
 0xb23   : > { %s2928_s29 = scalar_lea.hbm %s3072_s18, %s2104_s8  ;;  %s1797_s24 = scalar_lea.sflag [#allocation4], %s3073_s0 }
 0xb24   : > { %p2396_p5 = pneg %p2395_p4  ;;  %p2402_p8 = por %p2401_p7, %p2400_p6 }
 0xb26   : > { %p2403_p10 = pnand %p2402_p8, %p2396_p5 }
 0xb28   : > { %2406 = shalt.err (!%p2403_p10)
}
 0xb29   : > { %s2407_s19 = scalar_lea.hbm %s2928_s29, 128  ;;  %s2411_s30 = scalar_lea.hbm %s3072_s18, 256 }
 0xb2a   : > { %p2408_p11 = scmp.ne.s32.totalorder %s2928_s29, %s2407_s19  ;;  %p2412_p0 = scmp.lt.u32.totalorder %s2928_s29, %s3072_s18 }
 0xb2b   : > { %p2413_p1 = scmp.lt.u32.totalorder %s2411_s30, %s2407_s19  ;;  %p2415_p4 = scmp.lt.u32.totalorder %s2407_s19, %s2928_s29 }
 0xb2c   : > { %p2409_p12 = pnand %p2408_p11, %p2641_p3 }
 0xb2d   : > { %p2414_p2 = por %p2413_p1, %p2412_p0 }
 0xb2e   : > { %p2410_p13 = pneg %p2409_p12 }
 0xb2f   : > { %p2416_p5 = por %p2415_p4, %p2414_p2 }
 0xb31   : > { %p2417_p6 = pnand %p2416_p5, %p2410_p13 }
 0xb33   : > { %2420 = shalt.err (!%p2417_p6)
}
 0xb34   : > { %2300 = dma.vmem_to_hbm [thread:$0]  (%p2641_p3), %s1811_s20, 128, %s2928_s29, %s1797_s24  }
 0xb35 PF: > { %s3074_s23 = sld [smem:[#allocation13_spill]]  ;;  %s3075_s17 = sld [smem:[#allocation6_spill]] }
 0xb3b   : > { %p2306_p7 = scmp.ge.s32.totalorder %s3074_s23, 2  ;;  %s1822_s28 = sand.u32 1, %s3075_s17  }
 0xb3c   : > { %s1823_s4 = scalar_lea.sflag [#allocation4], %s1822_s28 }
 0xb3d   : > { %p2303_p8 = pnand %p2306_p7, %p2651_p9 }
 0xb3f   : > { %2454 = dma.done.wait (!%p2303_p8), %s1823_s4, 128  }
 0xb40   : > { %2456 = vsyncadd (!%p2303_p8), %s1823_s4, 4294967168  ;;  %s31_s20 = sadd.s32 1, %s3074_s23   ;;  %s3077_s27 = sld [smem:[#allocation7_spill]] }
 0xb41   : > { %p28_p10 = scmp.ge.s32.totalorder %s31_s20, 6   ;;  %s3078_s28 = sld [smem:[#allocation8_spill]] }
 0xb42   : > { %s3079_s29 = sld [smem:[#allocation18_spill]]  ;;  %s3080_s30 = sld [smem:[#allocation11_spill]] }
 0xb43   : > { %s3081_s0 = sld [smem:[#allocation12_spill]]  ;;  %s3082_s19 = sld [smem:[#allocation14_spill]] }
 0xb44   : > { %s3083_s1 = sld [smem:[#allocation16_spill]]  ;;  %30 = sbr.rel (!%p28_p10) target bundleno = 19 (0x13), region = 180 }
 0xb4b   :  { %1828 = vsyncpa [#allocation4], 1 }
 0xb4c   :  { %1830 = vsyncpa [#allocation4 + $0x1], 1 }

</bundles_post_ra>
